<compile_context>
chip_gen: v5e
topology: v5e:2x2
jax: 0.10.0
libtpu: 0.0.40
codegen_flags: <defaults>
</compile_context>

<pallas_src>
import math

import jax
import jax.numpy as jnp
from jax.experimental import pallas as pl
from jax.experimental.pallas import tpu as pltpu


def _concat_transform_kernel(x_ref, y_ref, wx_ref, wy_ref, c_ref, o_ref):
    # In-kernel operand cast (VPU has ample slack): HBM streaming stays a single pass
    # in the input dtype while the MXU sees `mxu_dtype` operands.  f32 accumulation.
    mxu_dtype = wx_ref.dtype
    acc = jnp.dot(x_ref[...].astype(mxu_dtype), wx_ref[...],
                  preferred_element_type=jnp.float32)
    acc = acc + jnp.dot(y_ref[...].astype(mxu_dtype), wy_ref[...],
                        preferred_element_type=jnp.float32)
    acc = acc + c_ref[...]            # (1, dp) f32 folded bias, broadcast over rows
    o_ref[...] = acc.astype(o_ref.dtype)


def _physical_vmem_bytes():
    """Per-core VMEM capacity; conservative 64 MiB (v7x) fallback if unqueryable."""
    try:
        return int(pltpu.get_tpu_info().vmem_capacity_bytes)
    except Exception:
        return 64 << 20


def _default_mxu_dtype():
    """bf16 MXU operands on v5e (no fast f32 MXU path), f32 elsewhere."""
    try:
        kind = jax.devices()[0].device_kind.lower()
    except Exception:
        return jnp.float32
    if "v5 lite" in kind or "v5e" in kind or "v5lite" in kind:
        return jnp.bfloat16
    return jnp.float32


def _sublane_min(dtype):
    # f32 -> 8, bf16 -> 16, int8/fp8 -> 32 (minimum second-to-last block dim).
    return max(8, 32 // jnp.dtype(dtype).itemsize)


def _resident_spec(shape):
    """Constant-index (resident) block; single-buffered when Pallas supports it."""
    index_map = lambda i: (0,) * len(shape)
    try:
        return pl.BlockSpec(shape, index_map, pipeline_mode=pl.Buffered(1))
    except (TypeError, AttributeError):
        return pl.BlockSpec(shape, index_map)


def concat_transform(x, y, w_pre, b_pre, w_post, b_post, *,
                     row_tile=8192, mxu_dtype=None, out_dtype=None):
    """
    x:      (N, D)   node embeddings
    y:      (N, H)   hidden vectors
    w_pre:  (D, H)   preW.weight   (torch Linear layout: out x in)
    b_pre:  (D,)     preW.bias
    w_post: (D, 2D)  postW.weight
    b_post: (D,)     postW.bias
    row_tile:   original rows per grid step (HBM-bound: bigger is better until VMEM;
                sweep 4096-16384 on real N).
    mxu_dtype:  operand dtype fed to the MXU (None -> bf16 on v5e, f32 otherwise);
                accumulation is always f32.  bf16 -> ~1e-2 relative error.
    out_dtype:  stored dtype (None -> x.dtype); bf16 halves output HBM traffic.
    returns (N, D)
    """
    n, d = x.shape
    h = y.shape[1]
    if out_dtype is None:
        out_dtype = x.dtype
    if mxu_dtype is None:
        mxu_dtype = _default_mxu_dtype()

    # ---- algebraic fold (exact in eval mode: composition of affine maps) ----
    wpy = w_post[:, d:].T.astype(jnp.float32)                          # (D, D)
    wx = w_post[:, :d].T.astype(jnp.float32)                           # (D, D)
    wy = w_pre.T.astype(jnp.float32) @ wpy                             # (H, D)
    c = b_pre.astype(jnp.float32) @ wpy + b_post.astype(jnp.float32)   # (D,)

    # ---- lane-dense packing: P original rows per 128-lane row (block-diagonal W) ----
    pack = 128 // d if (d <= 128 and 128 % d == 0) else 1
    sub = max(_sublane_min(x.dtype), _sublane_min(y.dtype), _sublane_min(out_dtype))

    # Minimal padding only: to the pack multiple (reshape requirement) and, for tiny N,
    # to one minimum (sub x 128) tile.  Ragged grid tails are handled by Pallas partial
    # last blocks (OOB rows masked on store, sliced off below) -- no full-array copy.
    n_pad = pl.cdiv(n, pack) * pack
    n_pad = max(n_pad, sub * pack)
    if n_pad != n:
        x = jnp.pad(x, ((0, n_pad - n), (0, 0)))
        y = jnp.pad(y, ((0, n_pad - n), (0, 0)))

    dp, hp = d * pack, h * pack
    x_p = x.reshape(n_pad // pack, dp)          # contiguous row-major: free reshape
    y_p = y.reshape(n_pad // pack, hp)
    n_rows = n_pad // pack                      # packed rows

    eye = jnp.eye(pack, dtype=jnp.float32)
    wx_p = jnp.kron(eye, wx).astype(mxu_dtype)  # (dp, dp) block-diagonal, resident
    wy_p = jnp.kron(eye, wy).astype(mxu_dtype)  # (hp, dp) block-diagonal, resident
    c_p = jnp.tile(c, pack).reshape(1, dp)      # (1, dp) f32 folded bias, resident

    # ---- tile sizing: as large as this generation's VMEM allows, >= 2 grid steps ----
    x_sz = jnp.dtype(x.dtype).itemsize
    y_sz = jnp.dtype(y.dtype).itemsize
    o_sz = jnp.dtype(out_dtype).itemsize
    w_sz = jnp.dtype(mxu_dtype).itemsize
    per_row_bytes = dp * x_sz + hp * y_sz + dp * o_sz     # streamed bytes / packed row
    weight_bytes = (dp * dp + hp * dp) * w_sz + dp * 4    # resident operands
    margin = 2 << 20

    phys = _physical_vmem_bytes()
    # ~40 MiB cap on v7x (64 MiB/TC), ~96 MiB on v5e/v6e (128 MiB).
    cap = max(16 << 20, min((phys * 3) // 4, phys - (24 << 20)))

    tile_rows = max(sub, (int(row_tile) // pack) // sub * sub)
    # If the requested tile does not fit, shrink the tile -- never clamp the VMEM
    # limit below the true footprint (that is a compile failure, not a perf knob).
    max_tile_rows = (cap - 2 * weight_bytes - margin) // (2 * per_row_bytes)
    max_tile_rows = max(sub, (max_tile_rows // sub) * sub)
    tile_rows = min(tile_rows, max_tile_rows)
    # Keep >= 2 grid steps when there is enough work: the 1-D "parallel" axis is the
    # only thing sharding rows across v7x's two TensorCores.  Never over-tile tiny N.
    if n_rows >= 2 * sub:
        tile_rows = min(tile_rows, sub * pl.cdiv(n_rows, 2 * sub))
    else:
        tile_rows = min(tile_rows, sub * pl.cdiv(n_rows, sub))

    grid_len = pl.cdiv(n_rows, tile_rows)

    stream_bytes = 2 * tile_rows * per_row_bytes           # double-buffered in/out tiles
    vmem_needed = stream_bytes + 2 * weight_bytes + margin
    vmem_limit = int(min(cap, vmem_needed)) if vmem_needed > (14 << 20) else None

    out_p = pl.pallas_call(
        _concat_transform_kernel,
        out_shape=jax.ShapeDtypeStruct((n_rows, dp), out_dtype),
        grid_spec=pltpu.PrefetchScalarGridSpec(
            num_scalar_prefetch=0,
            grid=(grid_len,),
            in_specs=[
                pl.BlockSpec((tile_rows, dp), lambda i: (i, 0)),   # packed X rows
                pl.BlockSpec((tile_rows, hp), lambda i: (i, 0)),   # packed Y rows
                _resident_spec((dp, dp)),                          # folded Wx (resident)
                _resident_spec((hp, dp)),                          # folded Wy (resident)
                _resident_spec((1, dp)),                           # folded bias (f32)
            ],
            out_specs=pl.BlockSpec((tile_rows, dp), lambda i: (i, 0)),
        ),
        compiler_params=pltpu.CompilerParams(
            dimension_semantics=("parallel",),   # rows split across TCs (v7x megacore)
            vmem_limit_bytes=vmem_limit,
        ),
    )(x_p, y_p, wx_p, wy_p, c_p)

    return out_p.reshape(n_pad, d)[:n]


def _init_linear(key, out_dim, in_dim):
    """Deterministic nn.Linear-style init: U(-1/sqrt(fan_in), 1/sqrt(fan_in))."""
    kw, kb = jax.random.split(key)
    bound = 1.0 / math.sqrt(in_dim)
    w = jax.random.uniform(kw, (out_dim, in_dim), jnp.float32, -bound, bound)
    b = jax.random.uniform(kb, (out_dim,), jnp.float32, -bound, bound)
    return w, b


def _reference(x, y, w_pre, b_pre, w_post, b_post):
    y_prime = y @ w_pre.T + b_pre
    concat = jnp.concatenate([x, y_prime], axis=1)
    return concat @ w_post.T + b_post


if __name__ == "__main__":
    NODE_EMB_DIM = 32
    HIDDEN_DIM = 32

    key = jax.random.PRNGKey(0)
    k_x, k_y, k_pre, k_post = jax.random.split(key, 4)
    w_pre, b_pre = _init_linear(k_pre, NODE_EMB_DIM, HIDDEN_DIM)
    w_post, b_post = _init_linear(k_post, NODE_EMB_DIM, 2 * NODE_EMB_DIM)

    # --- small N: single padded-to-minimum tile, f32 MXU (exact) ---
    N1 = 16
    x1 = jax.random.normal(k_x, (N1, NODE_EMB_DIM), jnp.float32)
    y1 = jax.random.normal(k_y, (N1, HIDDEN_DIM), jnp.float32)
    out1 = jax.block_until_ready(
        concat_transform(x1, y1, w_pre, b_pre, w_post, b_post,
                         mxu_dtype=jnp.float32))
    ref1 = _reference(x1, y1, w_pre, b_pre, w_post, b_post)
    assert out1.shape == (N1, NODE_EMB_DIM)
    assert jnp.allclose(out1, ref1, atol=1e-4, rtol=1e-4), "f32 small-N mismatch"

    # --- ragged N, multi-step parallel grid, partial last block, f32 MXU ---
    N2 = 1000
    x2 = jax.random.normal(jax.random.fold_in(k_x, 1), (N2, NODE_EMB_DIM), jnp.float32)
    y2 = jax.random.normal(jax.random.fold_in(k_y, 1), (N2, HIDDEN_DIM), jnp.float32)
    ref2 = _reference(x2, y2, w_pre, b_pre, w_post, b_post)
    out2 = jax.block_until_ready(
        concat_transform(x2, y2, w_pre, b_pre, w_post, b_post,
                         row_tile=256, mxu_dtype=jnp.float32))
    assert out2.shape == (N2, NODE_EMB_DIM)
    assert jnp.allclose(out2, ref2, atol=1e-4, rtol=1e-4), "f32 ragged-N mismatch"

    # --- default (generation-aware) config: large tile, >= 2 grid steps ---
    out3 = jax.block_until_ready(
        concat_transform(x2, y2, w_pre, b_pre, w_post, b_post))
    assert out3.shape == (N2, NODE_EMB_DIM)
    assert jnp.allclose(out3, ref2, atol=1e-1, rtol=1e-1), "default-config mismatch"

    # --- bf16 MXU operands (f32 accumulate) + bf16 stores; ~1e-2 relative error ---
    out4 = jax.block_until_ready(
        concat_transform(x2, y2, w_pre, b_pre, w_post, b_post,
                         mxu_dtype=jnp.bfloat16, out_dtype=jnp.bfloat16))
    assert out4.shape == (N2, NODE_EMB_DIM)
    assert out4.dtype == jnp.bfloat16
    assert jnp.allclose(out4.astype(jnp.float32), ref2, atol=1e-1, rtol=1e-1), \
        "bf16 variant mismatch"

    print("KERNEL_OK")
</pallas_src>

<mosaic_0001>
module attributes {stable_mosaic.version = 11 : i64} {
  func.func @_concat_transform_kernel(%arg0: i32, %arg1: memref<8x128xf32, #tpu.memory_space<vmem>>, %arg2: memref<8x128xf32, #tpu.memory_space<vmem>>, %arg3: memref<128x128xf32, #tpu.memory_space<vmem>>, %arg4: memref<128x128xf32, #tpu.memory_space<vmem>>, %arg5: memref<1x128xf32, #tpu.memory_space<vmem>>, %arg6: memref<8x128xf32, #tpu.memory_space<vmem>>) attributes {dimension_semantics = [#tpu.dimension_semantics<parallel>], iteration_bounds = array<i64: 1>, scalar_prefetch = 0 : i64, scratch_operands = 0 : i64, tpu.core_type = #tpu.core_type<tc>, window_params = [{transform_indices = @transform_0, window_bounds = array<i64: 8, 128>}, {transform_indices = @transform_1, window_bounds = array<i64: 8, 128>}, {pipeline_mode = #tpu.pipeline_mode<synchronous>, transform_indices = @transform_2, window_bounds = array<i64: 128, 128>}, {pipeline_mode = #tpu.pipeline_mode<synchronous>, transform_indices = @transform_3, window_bounds = array<i64: 128, 128>}, {pipeline_mode = #tpu.pipeline_mode<synchronous>, transform_indices = @transform_4, window_bounds = array<i64: 1, 128>}, {transform_indices = @transform_5, window_bounds = array<i64: 8, 128>}]} {
    %c0 = arith.constant 0 : index
    %c0_0 = arith.constant 0 : index
    %0 = vector.load %arg1[%c0, %c0_0] : memref<8x128xf32, #tpu.memory_space<vmem>>, vector<8x128xf32>
    %c0_1 = arith.constant 0 : index
    %c0_2 = arith.constant 0 : index
    %1 = vector.load %arg3[%c0_1, %c0_2] : memref<128x128xf32, #tpu.memory_space<vmem>>, vector<128x128xf32>
    %cst = arith.constant dense<0.000000e+00> : vector<8x128xf32>
    %2 = tpu.matmul %0, %1, %cst {dimension_numbers = #tpu.dot_dimension_numbers<[1], [0], [0], [1], [0, 0, 1, 1], [], []>} : vector<8x128xf32>, vector<128x128xf32>, vector<8x128xf32> -> vector<8x128xf32>
    %c0_3 = arith.constant 0 : index
    %c0_4 = arith.constant 0 : index
    %3 = vector.load %arg2[%c0_3, %c0_4] : memref<8x128xf32, #tpu.memory_space<vmem>>, vector<8x128xf32>
    %c0_5 = arith.constant 0 : index
    %c0_6 = arith.constant 0 : index
    %4 = vector.load %arg4[%c0_5, %c0_6] : memref<128x128xf32, #tpu.memory_space<vmem>>, vector<128x128xf32>
    %cst_7 = arith.constant dense<0.000000e+00> : vector<8x128xf32>
    %5 = tpu.matmul %3, %4, %cst_7 {dimension_numbers = #tpu.dot_dimension_numbers<[1], [0], [0], [1], [0, 0, 1, 1], [], []>} : vector<8x128xf32>, vector<128x128xf32>, vector<8x128xf32> -> vector<8x128xf32>
    %6 = arith.addf %2, %5 : vector<8x128xf32>
    %c0_8 = arith.constant 0 : index
    %c0_9 = arith.constant 0 : index
    %7 = vector.load %arg5[%c0_8, %c0_9] : memref<1x128xf32, #tpu.memory_space<vmem>>, vector<1x128xf32>
    %8 = vector.broadcast %7 : vector<1x128xf32> to vector<8x128xf32>
    %9 = arith.addf %6, %8 : vector<8x128xf32>
    %c0_10 = arith.constant 0 : index
    %c0_11 = arith.constant 0 : index
    %10 = vector.load %arg6[%c0_10, %c0_11] : memref<8x128xf32, #tpu.memory_space<vmem>>, vector<8x128xf32>
    tpu.vector_store %arg6[%c0_10, %c0_11], %9 {strides = array<i32>} : memref<8x128xf32, #tpu.memory_space<vmem>>, vector<8x128xf32>,
    return
  }
  func.func @transform_0(%arg0: i32) -> (i32, i32) {
    %c0_i32 = arith.constant 0 : i32
    %c0_i32_0 = arith.constant 0 : i32
    return %arg0, %c0_i32 : i32, i32
  }
  func.func @transform_1(%arg0: i32) -> (i32, i32) {
    %c0_i32 = arith.constant 0 : i32
    %c0_i32_0 = arith.constant 0 : i32
    return %arg0, %c0_i32 : i32, i32
  }
  func.func @transform_2(%arg0: i32) -> (i32, i32) {
    %c0_i32 = arith.constant 0 : i32
    %c0_i32_0 = arith.constant 0 : i32
    %c0_i32_1 = arith.constant 0 : i32
    return %c0_i32, %c0_i32_0 : i32, i32
  }
  func.func @transform_3(%arg0: i32) -> (i32, i32) {
    %c0_i32 = arith.constant 0 : i32
    %c0_i32_0 = arith.constant 0 : i32
    %c0_i32_1 = arith.constant 0 : i32
    return %c0_i32, %c0_i32_0 : i32, i32
  }
  func.func @transform_4(%arg0: i32) -> (i32, i32) {
    %c0_i32 = arith.constant 0 : i32
    %c0_i32_0 = arith.constant 0 : i32
    %c0_i32_1 = arith.constant 0 : i32
    return %c0_i32, %c0_i32_0 : i32, i32
  }
  func.func @transform_5(%arg0: i32) -> (i32, i32) {
    %c0_i32 = arith.constant 0 : i32
    %c0_i32_0 = arith.constant 0 : i32
    return %arg0, %c0_i32 : i32, i32
  }
}

</mosaic_0001>

<bundles_post_ra>
// kernel: tpu_custom_call.1
= control target key start
LH: loop header
LB: loop body
LE: loop exit
PB: predicated region body
PF: predicated region fallthrough
CT: control target
= control target key end

     0   :  { %10 = vsyncpa [#allocation3], 0  ;;  %s370_s0 = inlined_call_operand.hbm [shape: f32[8,128], index: 0, kind: input, shape index: {}]   ;;  %s371_s1 = inlined_call_operand.hbm [shape: f32[8,128], index: 1, kind: input, shape index: {}]   ;;  %s372_s2 = inlined_call_operand.hbm [shape: f32[128,128], index: 2, kind: input, shape index: {}]   ;;  %s373_s3 = inlined_call_operand.hbm [shape: f32[128,128], index: 3, kind: input, shape index: {}]   ;;  %s374_s4 = inlined_call_operand.vmem [shape: f32[1,128], index: 4, kind: input, shape index: {}]   ;;  %s375_s5 = inlined_call_operand.hbm [shape: f32[8,128], index: 5, kind: output, shape index: {}]  }
   0x1   :  { %11 = vsyncpa [#allocation6], 0 }
   0x2   :  { %12 = vsyncpa [#allocation9], 0  ;;  %s30_s20 = sshll.u32 %s371_s1, 4  ;;  %s31_s20 = int_to_ptr.hbm [resolvable:$true] %s30_s20 }
   0x3   :  { %13 = vsyncpa [#allocation4], 0  ;;  %s315_s21 = smov [#allocation5]   ;;  %s19_s25 = sshll.u32 %s370_s0, 4  ;;  %s20_s25 = int_to_ptr.hbm [resolvable:$true] %s19_s25 }
   0x4   :  { %s32_s22 = sshll.u32 %s315_s21, 4  ;;  %s316_s26 = smov [#allocation2]   ;;  %s33_s22 = int_to_ptr.vmem [resolvable:$true] %s32_s22 }
   0x5   :  { %35 = dma.hbm_to_vmem [thread:$0]  %s31_s20, 128, %s33_s22, [#allocation6]  }
   0x6   :  { %s21_s27 = sshll.u32 %s316_s26, 4  ;;  %s40_s30 = sshll.u32 %s372_s2, 4  ;;  %s22_s27 = int_to_ptr.vmem [resolvable:$true] %s21_s27  ;;  %s41_s30 = int_to_ptr.hbm [resolvable:$true] %s40_s30 }
   0x7   :  { %24 = dma.hbm_to_vmem [thread:$0]  %s20_s25, 128, %s22_s27, [#allocation3]  }
   0x8   :  { %s317_s1 = smov [#allocation7]   ;;  %s53_s9 = sshll.u32 %s373_s3, 4  ;;  %s54_s9 = int_to_ptr.hbm [resolvable:$true] %s53_s9 }
   0x9   :  { %s42_s6 = sshll.u32 %s317_s1, 4  ;;  %s318_s10 = smov 128   ;;  %s43_s6 = int_to_ptr.vmem [resolvable:$true] %s42_s6 }
   0xa   :  { %s319_s0 = smov 8   ;;  %s320_s11 = smov [#allocation8]  }
   0xb   :  { %48 = dma.hbm_to_vmem [thread:$0]  %s41_s30, 2048, %s43_s6, [#allocation6], %s318_s10, %s318_s10, %s319_s0  }
   0xc   :  { %s55_s12 = sshll.u32 %s320_s11, 4  ;;  %s56_s12 = int_to_ptr.vmem [resolvable:$true] %s55_s12 }
   0xd   :  { %61 = dma.hbm_to_vmem [thread:$0]  %s54_s9, 2048, %s56_s12, [#allocation9], %s318_s10, %s318_s10, %s319_s0  }
   0xe   :  { %307 = dma.done.wait [#allocation3], 128  }
   0xf   :  { %308 = vsyncadd [#allocation3], 4294967168 }
  0x10   :  { %309 = dma.done.wait [#allocation6], 2176  }
  0x11   :  { %310 = vsyncadd [#allocation6], 4294965120 }
  0x12   :  { %311 = dma.done.wait [#allocation9], 2048  }
  0x13   :  { %312 = vsyncadd [#allocation9], 4294965248  ;;  %v113_v0 = vld [vmem:[#allocation8 + $0x78] sm:$0xff]  ;;  %v112_v2 = vld [vmem:[#allocation8 + $0x70] sm:$0xff]  ;;  %s321_s13 = smov [#allocation10]   ;;  %s167_s17 = sshll.u32 %s375_s5, 4  ;;  %s168_s17 = int_to_ptr.hbm [resolvable:$true] %s167_s17 }
  0x14   :  { %v96_v1 = vld [vmem:[#allocation7 + $0x78] sm:$0xff]  ;;  %114 = vmatpush.msra.mxu0 %v113_v0  ;;  %v95_v3 = vld [vmem:[#allocation7 + $0x70] sm:$0xff]  ;;  %v111_v4 = vld [vmem:[#allocation8 + $0x68] sm:$0xff]  ;;  %s165_s14 = sshll.u32 %s321_s13, 4  ;;  %s166_s14 = int_to_ptr.vmem [resolvable:$true] %s165_s14 }
  0x15   :  { %134 = vmatpush.msra.mxu1 %v96_v1  ;;  %v94_v5 = vld [vmem:[#allocation7 + $0x68] sm:$0xff]  ;;  %v110_v6 = vld [vmem:[#allocation8 + $0x60] sm:$0xff]  ;;  %v109_v8 = vld [vmem:[#allocation8 + $0x58] sm:$0xff] }
  0x16   :  { %115 = vmatpush.msra.mxu0 %v112_v2  ;;  %v93_v7 = vld [vmem:[#allocation7 + $0x60] sm:$0xff]  ;;  %v92_v9 = vld [vmem:[#allocation7 + $0x58] sm:$0xff]  ;;  %v108_v10 = vld [vmem:[#allocation8 + $0x50] sm:$0xff] }
  0x17   :  { %135 = vmatpush.msra.mxu1 %v95_v3  ;;  %v91_v11 = vld [vmem:[#allocation7 + $0x50] sm:$0xff]  ;;  %v107_v12 = vld [vmem:[#allocation8 + $0x48] sm:$0xff]  ;;  %v106_v14 = vld [vmem:[#allocation8 + $0x40] sm:$0xff] }
  0x18   :  { %116 = vmatpush.msra.mxu0 %v111_v4  ;;  %v90_v13 = vld [vmem:[#allocation7 + $0x48] sm:$0xff]  ;;  %v89_v15 = vld [vmem:[#allocation7 + $0x40] sm:$0xff]  ;;  %v105_v16 = vld [vmem:[#allocation8 + $0x38] sm:$0xff] }
  0x19   :  { %136 = vmatpush.msra.mxu1 %v94_v5  ;;  %v88_v17 = vld [vmem:[#allocation7 + $0x38] sm:$0xff]  ;;  %v104_v18 = vld [vmem:[#allocation8 + $0x30] sm:$0xff]  ;;  %v103_v20 = vld [vmem:[#allocation8 + $0x28] sm:$0xff] }
  0x1a   :  { %117 = vmatpush.msra.mxu0 %v110_v6  ;;  %v87_v19 = vld [vmem:[#allocation7 + $0x30] sm:$0xff]  ;;  %v86_v21 = vld [vmem:[#allocation7 + $0x28] sm:$0xff]  ;;  %v102_v22 = vld [vmem:[#allocation8 + $0x20] sm:$0xff] }
  0x1b   :  { %137 = vmatpush.msra.mxu1 %v93_v7  ;;  %v85_v23 = vld [vmem:[#allocation7 + $0x20] sm:$0xff]  ;;  %v101_v24 = vld [vmem:[#allocation8 + $0x18] sm:$0xff]  ;;  %v100_v26 = vld [vmem:[#allocation8 + $0x10] sm:$0xff] }
  0x1c   :  { %118 = vmatpush.msra.mxu0 %v109_v8  ;;  %v84_v25 = vld [vmem:[#allocation7 + $0x18] sm:$0xff]  ;;  %v83_v27 = vld [vmem:[#allocation7 + $0x10] sm:$0xff]  ;;  %v99_v28 = vld [vmem:[#allocation8 + $0x8] sm:$0xff] }
  0x1d   :  { %138 = vmatpush.msra.mxu1 %v92_v9  ;;  %v82_v29 = vld [vmem:[#allocation7 + $0x8] sm:$0xff]  ;;  %v98_v30 = vld [vmem:[#allocation8] sm:$0xff]  ;;  %v97_v32 = vld [vmem:[#allocation5] sm:$0xff] }
  0x1e   :  { %119 = vmatpush.msra.mxu0 %v108_v10  ;;  %v81_v31 = vld [vmem:[#allocation7] sm:$0xff]  ;;  %v80_v33 = vld [vmem:[#allocation2] sm:$0xff] }
  0x1f   :  { %139 = vmatpush.msra.mxu1 %v91_v11  ;;  %v186_v34 = vld [vmem:[%s374_s4] ss:$0 sm:$0xff] }
  0x20   :  { %120 = vmatpush.msra.mxu0 %v107_v12 }
  0x21   :  { %140 = vmatpush.msra.mxu1 %v90_v13 }
  0x22   :  { %121 = vmatpush.msra.mxu0 %v106_v14 }
  0x23   :  { %141 = vmatpush.msra.mxu1 %v89_v15 }
  0x24   :  { %122 = vmatpush.msra.mxu0 %v105_v16 }
  0x25   :  { %142 = vmatpush.msra.mxu1 %v88_v17 }
  0x26   :  { %123 = vmatpush.msra.mxu0 %v104_v18 }
  0x27   :  { %143 = vmatpush.msra.mxu1 %v87_v19 }
  0x28   :  { %124 = vmatpush.msra.mxu0 %v103_v20 }
  0x29   :  { %144 = vmatpush.msra.mxu1 %v86_v21 }
  0x2a   :  { %125 = vmatpush.msra.mxu0 %v102_v22 }
  0x2b   :  { %145 = vmatpush.msra.mxu1 %v85_v23 }
  0x2c   :  { %126 = vmatpush.msra.mxu0 %v101_v24 }
  0x2d   :  { %146 = vmatpush.msra.mxu1 %v84_v25 }
  0x2e   :  { %127 = vmatpush.msra.mxu0 %v100_v26 }
  0x2f   :  { %147 = vmatpush.msra.mxu1 %v83_v27 }
  0x30   :  { %128 = vmatpush.msra.mxu0 %v99_v28 }
  0x31   :  { %148 = vmatpush.msra.mxu1 %v82_v29 }
  0x32   :  { %129 = vmatpush.msra.mxu0 %v98_v30 }
  0x33   :  { %149 = vmatpush.msra.mxu1 %v81_v31  ;;  %130 = vmatmul.f32.vlgmr.msra.gmra.mxu0 %v97_v32 }
  0x34   :  { %150 = vmatmul.f32.vlgmr.msra.gmra.mxu1 %v80_v33 }
  0xb0   :  { %v131_v35 = vpop.f32.mrf.mxu0 }
  0xb1   :  { %v151_v36 = vpop.f32.mrf.mxu1 }
  0xb2   :  { %v152_v37 = vadd.f32 %v151_v36, %v131_v35 }
  0xb4   :  { %v158_v38 = vadd.f32 %v186_v34, %v152_v37 }
  0xb6   :  { %159 = vst [vmem:[#allocation10] sm:$0xff] %v158_v38 }
  0xb7   :  { %170 = dma.vmem_to_hbm [thread:$0]  %s166_s14, 128, %s168_s17, [#allocation4]  }
  0xb8   :  { %313 = dma.done.wait [#allocation4], 128  }
  0xb9   :  { %314 = vsyncadd [#allocation4], 4294967168 }
  0xba   :  { %175 = vsyncpa [#allocation3], 1 }
  0xbb   :  { %176 = vsyncpa [#allocation6], 1 }
  0xbc   :  { %177 = vsyncpa [#allocation9], 1 }
  0xbd   :  { %178 = vsyncpa [#allocation4], 1 }

</bundles_post_ra>
